<compile_context>
chip_gen: v5e
topology: v5e:2x2
jax: 0.10.0
libtpu: 0.0.40
codegen_flags: <defaults>
</compile_context>

<pallas_src>
import functools

import jax
import jax.numpy as jnp
from jax.experimental import pallas as pl
from jax.experimental.pallas import tpu as pltpu


def _causal_conv1d_kernel(x_ref, w_ref, b_ref, o_ref, *scratch,
                          K, pad, L_tile, use_roll):
    # x_ref : (C_in, L_tile)    current time tile (channels on sublanes, time on lanes)
    # w_ref : (C_out, K*C_in)   taps folded onto the contraction axis
    # b_ref : (C_out, 1)        f32 bias column
    # o_ref : (C_out, L_tile)   lane-dense output tile
    # scratch[0] (roll path only): (C_in, L_tile) previous time tile (halo carrier)
    x = x_ref[...]

    if pad == 0:
        # kernel_size == 1: plain 1x1 conv, no halo needed.
        stacked = x
    elif use_roll:
        prev_ref, = scratch

        @pl.when(pl.program_id(1) == 0)
        def _():
            # First time tile of this batch row: halo == causal zero padding.
            prev_ref[...] = jnp.zeros_like(prev_ref)

        prev = prev_ref[...]
        lane = jax.lax.broadcasted_iota(jnp.int32, x.shape, dimension=1)

        # Tap j needs x_padded[:, j : j + L_tile] where x_padded = [halo | x].
        # Build it as: take `prev` on the last (pad-j) lanes, `x` elsewhere,
        # then rotate right by (pad-j).  One VPU select + one XLU roll per tap,
        # no lane-unaligned slices, no (C_in, L_tile+pad) concat copy.
        parts = []
        for j in range(K):
            s = pad - j
            if s == 0:
                parts.append(x)
            else:
                m = jnp.where(lane >= L_tile - s, prev, x)
                parts.append(pltpu.roll(m, shift=s, axis=1))
        stacked = jnp.concatenate(parts, axis=0)          # (K*C_in, L_tile)

        # Carry this tile as the next time step's halo (plain aligned copy).
        prev_ref[...] = x
    else:
        # Small / non-128-multiple L: a single tile covers the whole sequence,
        # so the halo is just the causal zero padding.  Tiles are tiny here, so
        # the concat/slice relayouts are irrelevant.
        xp = jnp.concatenate(
            [jnp.zeros((x.shape[0], pad), x.dtype), x], axis=-1)
        parts = [xp[:, j:j + L_tile] for j in range(K)]
        stacked = jnp.concatenate(parts, axis=0)

    acc = jnp.dot(w_ref[...], stacked, preferred_element_type=jnp.float32)
    o_ref[...] = (acc + b_ref[...]).astype(o_ref.dtype)


def _round_up(x, m):
    return ((x + m - 1) // m) * m


def _per_lane_vmem_bytes(C_in, C_out, K, itemsize):
    """Approx VMEM bytes needed per output lane (per time-step column)."""
    r8 = lambda c: _round_up(max(c, 1), 8)
    b = 0
    b += 2 * r8(C_in) * itemsize        # x tile, double buffered
    b += 2 * r8(C_out) * itemsize       # out tile, double buffered
    b += r8(C_in) * itemsize            # prev-tile halo scratch
    b += r8(K * C_in) * 4               # stacked (K*C_in, L) operand (f32-ish)
    b += r8(C_out) * 4                  # f32 accumulator
    b += 2 * r8(C_in) * 4               # roll / select temporaries
    return b


def _pick_l_tile(L, C_in, C_out, K, itemsize, budget_bytes=24 << 20, cap=2048):
    """Largest multiple of 128 dividing L that fits the VMEM budget (<= cap)."""
    if L % 128 != 0:
        return L                        # full-array block satisfies the (8,128) rule
    per_lane = _per_lane_vmem_bytes(C_in, C_out, K, itemsize)
    t = min(cap, (budget_bytes // per_lane) // 128 * 128, L)
    t = max(t, 128)
    t -= t % 128
    while L % t:
        t -= 128
    return t


def _vmem_limit_bytes(L_tile, C_in, C_out, K, itemsize):
    """Derive the scoped-VMEM limit from the footprint; keep <= ~48 MiB for v7x."""
    r8 = lambda c: _round_up(max(c, 1), 8)
    r128 = lambda l: _round_up(max(l, 1), 128)
    tile_bytes = _per_lane_vmem_bytes(C_in, C_out, K, itemsize) * r128(L_tile)
    const_bytes = (2 * r8(C_out) * r128(K * C_in) * itemsize   # weights (dbl-buf)
                   + 2 * r8(C_out) * 128 * 4)                  # bias (dbl-buf)
    need = tile_bytes + const_bytes
    limit = int(1.5 * need) + (4 << 20)
    limit = max(limit, 16 << 20)
    # Stay within v7x's 64 MiB VMEM when possible; never cap below the footprint.
    limit = min(limit, max(48 << 20, need + (4 << 20)))
    return limit


def causal_conv1d(x_ncl, weight, bias, *, l_tile=None):
    """x_ncl: (N, C_in, L); weight: (C_out, C_in, K); bias: (C_out,) -> (N, C_out, L)."""
    N, C_in, L = x_ncl.shape
    C_out, wc_in, K = weight.shape
    assert wc_in == C_in, (wc_in, C_in)
    pad = K - 1
    itemsize = jnp.dtype(x_ncl.dtype).itemsize

    L_tile = _pick_l_tile(L, C_in, C_out, K, itemsize) if l_tile is None else l_tile
    if L_tile != L and (L % L_tile != 0 or L_tile % 128 != 0):
        raise ValueError(
            f"l_tile={L_tile} must divide L={L} and be a multiple of 128 "
            "(or equal L) to satisfy the TPU (8,128) block constraint.")
    num_tiles = L // L_tile
    use_roll = pad > 0 and L_tile % 128 == 0

    # Fold the K taps into the contraction axis (done once, in the wrapper):
    # w_kernel[o, j*C_in + c] == weight[o, c, j].
    w_kernel = jnp.transpose(weight, (0, 2, 1)).reshape(C_out, K * C_in)
    b_kernel = bias.reshape(C_out, 1).astype(jnp.float32)

    kernel = functools.partial(_causal_conv1d_kernel, K=K, pad=pad,
                               L_tile=L_tile, use_roll=use_roll)

    scratch_shapes = []
    if use_roll:
        # Halo carried across the sequential time axis: previous x tile.
        scratch_shapes.append(pltpu.VMEM((C_in, L_tile), x_ncl.dtype))

    # Weights / bias have constant index_maps so Pallas never re-DMAs them;
    # the second pipeline buffer they keep is only a few KiB here.
    out = pl.pallas_call(
        kernel,
        out_shape=jax.ShapeDtypeStruct((N, C_out, L), x_ncl.dtype),
        grid_spec=pltpu.PrefetchScalarGridSpec(
            num_scalar_prefetch=0,
            grid=(N, num_tiles),
            in_specs=[
                pl.BlockSpec((None, C_in, L_tile), lambda n, l: (n, 0, l)),
                pl.BlockSpec((C_out, K * C_in), lambda n, l: (0, 0)),
                pl.BlockSpec((C_out, 1), lambda n, l: (0, 0)),
            ],
            out_specs=pl.BlockSpec((None, C_out, L_tile), lambda n, l: (n, 0, l)),
            scratch_shapes=scratch_shapes,
        ),
        compiler_params=pltpu.CompilerParams(
            # Time axis carries the halo scratch -> sequential ("arbitrary");
            # batch stays "parallel" so v7x's two TensorCores share the work.
            dimension_semantics=("parallel",
                                 "arbitrary" if use_roll else "parallel"),
            vmem_limit_bytes=_vmem_limit_bytes(L_tile, C_in, C_out, K, itemsize),
        ),
    )(x_ncl, w_kernel, b_kernel)
    return out


def _reference(x, weight, bias):
    """Plain-JAX reference matching PyTorch CausalConv1D.forward (NCL layout)."""
    N, C_in, L = x.shape
    C_out, _, K = weight.shape
    pad = K - 1
    xp = jnp.pad(x, ((0, 0), (0, 0), (pad, 0)))
    out = jnp.zeros((N, C_out, L), jnp.float32) + bias[None, :, None].astype(jnp.float32)
    for j in range(K):
        out = out + jnp.einsum("oc,ncl->nol",
                               weight[:, :, j].astype(jnp.float32),
                               xp[:, :, j:j + L].astype(jnp.float32),
                               precision=jax.lax.Precision.HIGHEST)
    return out.astype(x.dtype)


if __name__ == "__main__":
    # Small shapes consistent with Conv1d: batch=2, in_channels=4,
    # out_channels=8, kernel_size=3, sequence length L=16.
    N, C_in, C_out, K, L = 2, 4, 8, 3, 16

    key = jax.random.PRNGKey(0)
    kx, kw, kb = jax.random.split(key, 3)
    x = jax.random.normal(kx, (N, C_in, L), dtype=jnp.float32)
    weight = jax.random.normal(kw, (C_out, C_in, K), dtype=jnp.float32) * 0.1
    bias = jax.random.normal(kb, (C_out,), dtype=jnp.float32) * 0.1

    # Tolerance covers possible reduced-precision MXU passes while still
    # catching any structural (tap alignment / halo) error, which would be
    # O(0.1-1) per element.
    TOL = dict(atol=1e-2, rtol=1e-2)

    # 1) Small, non-128-multiple L: single-tile path (no rolls, zero halo).
    out = causal_conv1d(x, weight, bias)
    jax.block_until_ready(out)
    ref = _reference(x, weight, bias)
    assert out.shape == (N, C_out, L), out.shape
    assert jnp.allclose(out, ref, **TOL), "mismatch vs reference (single tile)"

    # 2) Longer sequence, forced multi-tile: roll + scratch-carried-halo path.
    L2 = 512
    x2 = jax.random.normal(kx, (N, C_in, L2), dtype=jnp.float32)
    out2 = causal_conv1d(x2, weight, bias, l_tile=128)
    jax.block_until_ready(out2)
    ref2 = _reference(x2, weight, bias)
    assert out2.shape == (N, C_out, L2), out2.shape
    assert jnp.allclose(out2, ref2, **TOL), "mismatch vs reference (tiled/roll)"

    print("KERNEL_OK")
</pallas_src>

<mosaic_0001>
module attributes {stable_mosaic.version = 11 : i64} {
  func.func @_causal_conv1d_kernel(%arg0: i32, %arg1: i32, %arg2: memref<1x4x16xf32, #tpu.memory_space<vmem>>, %arg3: memref<8x12xf32, #tpu.memory_space<vmem>>, %arg4: memref<8x1xf32, #tpu.memory_space<vmem>>, %arg5: memref<1x8x16xf32, #tpu.memory_space<vmem>>) attributes {dimension_semantics = [#tpu.dimension_semantics<parallel>, #tpu.dimension_semantics<parallel>], iteration_bounds = array<i64: 2, 1>, scalar_prefetch = 0 : i64, scratch_operands = 0 : i64, tpu.core_type = #tpu.core_type<tc>, window_params = [{transform_indices = @transform_0, window_bounds = array<i64: 1, 4, 16>}, {pipeline_mode = #tpu.pipeline_mode<synchronous>, transform_indices = @transform_1, window_bounds = array<i64: 8, 12>}, {pipeline_mode = #tpu.pipeline_mode<synchronous>, transform_indices = @transform_2, window_bounds = array<i64: 8, 1>}, {transform_indices = @transform_3, window_bounds = array<i64: 1, 8, 16>}]} {
    %c0 = arith.constant 0 : index
    %c0_0 = arith.constant 0 : index
    %c0_1 = arith.constant 0 : index
    %0 = vector.load %arg2[%c0, %c0_0, %c0_1] : memref<1x4x16xf32, #tpu.memory_space<vmem>>, vector<1x4x16xf32>
    %1 = vector.shape_cast %0 : vector<1x4x16xf32> to vector<4x16xf32>
    %cst = arith.constant 0.000000e+00 : f32
    %2 = vector.broadcast %cst : f32 to vector<4x2xf32>
    %3 = tpu.concatenate %2, %1 in 1 : vector<4x2xf32>, vector<4x16xf32> -> vector<4x18xf32>
    %4 = vector.extract_strided_slice %3 {offsets = [0, 0], sizes = [4, 16], strides = [1, 1]} : vector<4x18xf32> to vector<4x16xf32>
    %5 = vector.extract_strided_slice %3 {offsets = [0, 1], sizes = [4, 16], strides = [1, 1]} : vector<4x18xf32> to vector<4x16xf32>
    %6 = vector.extract_strided_slice %3 {offsets = [0, 2], sizes = [4, 16], strides = [1, 1]} : vector<4x18xf32> to vector<4x16xf32>
    %7 = tpu.concatenate %4, %5, %6 in 0 : vector<4x16xf32>, vector<4x16xf32>, vector<4x16xf32> -> vector<12x16xf32>
    %c0_2 = arith.constant 0 : index
    %c0_3 = arith.constant 0 : index
    %8 = vector.load %arg3[%c0_2, %c0_3] : memref<8x12xf32, #tpu.memory_space<vmem>>, vector<8x12xf32>
    %cst_4 = arith.constant dense<0.000000e+00> : vector<8x16xf32>
    %9 = tpu.matmul %8, %7, %cst_4 {dimension_numbers = #tpu.dot_dimension_numbers<[1], [0], [0], [1], [0, 0, 1, 1], [], []>} : vector<8x12xf32>, vector<12x16xf32>, vector<8x16xf32> -> vector<8x16xf32>
    %c0_5 = arith.constant 0 : index
    %c0_6 = arith.constant 0 : index
    %10 = vector.load %arg4[%c0_5, %c0_6] : memref<8x1xf32, #tpu.memory_space<vmem>>, vector<8x1xf32>
    %11 = vector.broadcast %10 : vector<8x1xf32> to vector<8x16xf32>
    %12 = arith.addf %9, %11 : vector<8x16xf32>
    %c0_7 = arith.constant 0 : index
    %c0_8 = arith.constant 0 : index
    %c0_9 = arith.constant 0 : index
    %13 = vector.load %arg5[%c0_7, %c0_8, %c0_9] : memref<1x8x16xf32, #tpu.memory_space<vmem>>, vector<1x8x16xf32>
    %14 = vector.shape_cast %13 : vector<1x8x16xf32> to vector<8x16xf32>
    %15 = vector.shape_cast %12 : vector<8x16xf32> to vector<1x8x16xf32>
    tpu.vector_store %arg5[%c0_7, %c0_8, %c0_9], %15 {strides = array<i32>} : memref<1x8x16xf32, #tpu.memory_space<vmem>>, vector<1x8x16xf32>,
    return
  }
  func.func @transform_0(%arg0: i32, %arg1: i32) -> (i32, i32, i32) {
    %c0_i32 = arith.constant 0 : i32
    %c0_i32_0 = arith.constant 0 : i32
    return %arg0, %c0_i32, %arg1 : i32, i32, i32
  }
  func.func @transform_1(%arg0: i32, %arg1: i32) -> (i32, i32) {
    %c0_i32 = arith.constant 0 : i32
    %c0_i32_0 = arith.constant 0 : i32
    %c0_i32_1 = arith.constant 0 : i32
    return %c0_i32, %c0_i32_0 : i32, i32
  }
  func.func @transform_2(%arg0: i32, %arg1: i32) -> (i32, i32) {
    %c0_i32 = arith.constant 0 : i32
    %c0_i32_0 = arith.constant 0 : i32
    %c0_i32_1 = arith.constant 0 : i32
    return %c0_i32, %c0_i32_0 : i32, i32
  }
  func.func @transform_3(%arg0: i32, %arg1: i32) -> (i32, i32, i32) {
    %c0_i32 = arith.constant 0 : i32
    %c0_i32_0 = arith.constant 0 : i32
    return %arg0, %c0_i32, %arg1 : i32, i32, i32
  }
}

</mosaic_0001>

<bundles_post_ra>
// kernel: tpu_custom_call.1
= control target key start
LH: loop header
LB: loop body
LE: loop exit
PB: predicated region body
PF: predicated region fallthrough
CT: control target
= control target key end

     0   :  { %8 = vsyncpa [#allocation3], 0  ;;  %s686_s0 = inlined_call_operand.vmem [shape: f32[2,4,16], index: 0, kind: input, shape index: {}]   ;;  %s687_s1 = inlined_call_operand.hbm [shape: f32[8,12], index: 1, kind: input, shape index: {}]   ;;  %s688_s2 = inlined_call_operand.vmem [shape: f32[8,1], index: 2, kind: input, shape index: {}]   ;;  %s689_s3 = inlined_call_operand.hbm [shape: f32[2,8,16], index: 3, kind: output, shape index: {}]  }
   0x1   :  { %9 = vsyncpa [#allocation4], 0 }
   0x2   :  { %11 = vsyncpa [#allocation4 + $0x1], 0  ;;  %s583_s12 = smov 0   ;;  %s585_s13 = smov 0  }
   0x3   :  { %s587_s14 = smov 0   ;;  %s589_s15 = smov 0  }
   0x4   :  { %s591_s16 = smov 0   ;;  %s593_s17 = smov 0  }
   0x5 LB: > { %s357_s18 = sadd.s32 4294967295, %s556_s17   ;;  %s358_s19 = sadd.s32 4294967294, %s556_s17   ;;  %s556_s17 = sphi %s593_s17, %s17_s17   ;;  %s552_s16 = sphi %s591_s16, %s696_s16   ;;  %s548_s15 = sphi %s589_s15, %s695_s15   ;;  %s544_s14 = sphi %s587_s14, %s694_s14   ;;  %s540_s13 = sphi %s585_s13, %s693_s13   ;;  %s536_s12 = sphi %s583_s12, %s692_s12  }
   0x6   : > { %s29_s20 = sadd.s32 1, %s552_s16  ;;  %s108_s21 = sadd.s32 1, %s544_s14 }
   0x7   : > { %p31_p0 = scmp.ge.s32.totalorder %s29_s20, 2  ;;  %p118_p1 = scmp.ne.s32.totalorder %s544_s14, %s540_s13 }
   0x8   : > { %p119_p2 = scmp.eq.s32.totalorder %s357_s18, 1  ;;  %p124_p3 = scmp.ne.s32.totalorder %s540_s13, %s536_s12 }
   0x9   : > { %s698_s20 = smov (%p31_p0, %s29_s20), 0  ;;  %p125_p5 = scmp.eq.s32.totalorder %s358_s19, 1 }
   0xa   : > { %p623_p4 = por %p119_p2, %p118_p1  ;;  %s103_s23 = ssub.s32 %s552_s16, %s698_s20 }
   0xb   : > { %p359_p6 = scmp.ge.s32.totalorder %s556_s17, 1  ;;  %p106_p7 = scmp.eq.s32.totalorder %s103_s23, 0 }
   0xc   : > { %p630_p8 = por %p125_p5, %p124_p3  ;;  %p132_p9 = scmp.lt.s32.totalorder %s556_s17, 3 }
   0xd   : > { %s636_s25 = scalar_select %p106_p7, %s544_s14, %s108_s21  }
   0xe   : > { %p133_p10 = pnand %p359_p6, %p132_p9  ;;  %p386_p11 = scmp.eq.s32.totalorder %s357_s18, 0 }
   0xf   : > { %s144_s28 = sshll.u32 %s687_s1, 4  ;;  %s558_s29 = smov [#allocation2]   ;;  %s145_s28 = int_to_ptr.hbm [resolvable:$true] %s144_s28 }
  0x10   : > { %p378_p12 = pneg %p133_p10  ;;  %s146_s30 = sshll.u32 %s558_s29, 4  ;;  %s147_s30 = int_to_ptr.vmem [resolvable:$true] %s146_s30 }
  0x11   : > { %172 = sbr.rel (%p133_p10) target bundleno = 396 (0x18c), region = 32 }
  0x12   : > { %p379_p13 = pnand %p386_p11, %p378_p12 }
  0x14   : > { %381 = dma.hbm_to_vmem [thread:$0]  (!%p379_p13), %s145_s28, 128, %s147_s30, [#allocation3]  }
  0x16   : > { %527 = dma.done.wait (%p386_p11), [#allocation3], 128  }
  0x17   : > { %529 = vsyncadd (%p386_p11), [#allocation3], 4294967168  ;;  %p199_p0 = scmp.lt.s32.totalorder %s548_s15, 1  ;;  %s559_s9 = smov 2   ;;  %vm211_vm0 = vcmask 15360   ;;  %v223_v4 = vld [vmem:[%s688_s2] sm:$0xff] }
  0x18   : > { %s560_s10 = smov 126   ;;  %s561_s11 = smov 127   ;;  %v562_v5 = vmov 0   ;;  %vm220_vm1 = vcmask 1043456   ;;  %v222_v8 = vld [vmem:[#allocation2] sm:$0xff]  ;;  %vm229_vm2 = vcmask 97280  }
  0x19   : > { %s200_s4 = scalar_select %p199_p0, %s548_s15, 1  ;;  %442 = vset.pattern.permute.xlu1 %v562_v5  ;;  %443 = vset.pattern.permute.xlu0 %v562_v5  ;;  %vm255_vm3 = vcmask 130048  }
  0x1a   : > { %s196_s21 = sand.u32 1, %s540_s13   ;;  %s369_s26 = sshll.u32 %s548_s15, 3 }
  0x1b   : > { %s365_s5 = sshll.u32 %s200_s4, 2  ;;  %s364_s23 = sshll.u32 %s196_s21, 3 }
  0x1c   : > { %s205_s8 = scalar_lea.vmem %s686_s0, %s365_s5  ;;  %s269_s29 = scalar_lea.hbm %s689_s3, %s369_s26 }
  0x1d   : > { %v206_v0 = vld [vmem:[%s205_s8] sm:$0xf]  ;;  %s198_s30 = scalar_lea.vmem [#allocation5], %s364_s23  ;;  %s273_s5 = sshll.u32 %s269_s29, 4  ;;  %s274_s5 = int_to_ptr.hbm [resolvable:$true] %s273_s5 }
  0x1e   : > { %208 = vrot.lane.b32.xlu0 %v206_v0, %s559_s9  ;;  %s271_s4 = sshll.u32 %s198_s30, 4  ;;  %s258_s6 = scalar_lea.sflag [#allocation4], %s196_s21  ;;  %s272_s4 = int_to_ptr.vmem [resolvable:$true] %s271_s4 }
  0x1f   : > { %s488_s7 = sshra.s32 %s274_s5, 4  ;;  %s489_s7 = int_to_ptr.hbm [resolvable:$true] %s488_s7 }
  0x20   : > { %s490_s8 = scalar_lea.hbm %s489_s7, 8  ;;  %p495_p5 = scmp.lt.s32.totalorder %s489_s7, %s689_s3 }
  0x21   : > { %p491_p1 = scmp.ne.s32.totalorder %s489_s7, %s490_s8 }
  0x23   : > { %p492_p2 = pnand %p491_p1, %p623_p4 }
  0x25   : > { %p493_p3 = pneg %p492_p2 }
  0x90   : > { %v209_v1 = vpop.permute.xlu0 %208 }
  0x91   : > { %v212_v2 = vsel %vm211_vm0, 0.0, %v209_v1 }
  0x92   : > { %218 = vrot.lane.b32.xlu0 %v212_v2, %s560_s10  ;;  %v214_v3 = vrot.slane %v212_v2, 4  ;;  %s494_s10 = scalar_lea.hbm %s689_s3, 16 }
  0x93   : > { %p496_p6 = scmp.lt.s32.totalorder %s494_s10, %s490_s8 }
  0x94   : > { %215 = vrot.lane.b32.xlu1 %v214_v3, %s561_s11 }
  0x95   : > { %p497_p7 = por %p496_p6, %p495_p5 }
  0x97   : > { %p498_p9 = pnand %p497_p7, %p493_p3 }
  0x9c   : > { %226 = vperm.xlu1 %442, %v223_v4  }
 0x104   : > { %v219_v6 = vpop.permute.xlu0 %218 }
 0x105   : > { %366 = vmatpush.msk.msra.mxu0 %vm220_vm1, %v219_v6 }
 0x106   : > { %v216_v7 = vpop.permute.xlu1 %215 }
 0x107   : > { %v221_v9 = vsel %vm220_vm1, %v212_v2, %v216_v7 }
 0x108   : > { %250 = vmatpush.msra.mxu0 %v221_v9 }
 0x109   : > { %367 = vmatmul.msk.f32.vlgmr.msra.gmra.mxu0 %vm229_vm2, %v222_v8 }
 0x10e   : > { %v227_v10 = vpop.permute.xlu1 %226 }
 0x186   : > { %v252_v11 = vpop.f32.mrf.mxu0 }
 0x187   : > { %v253_v12 = vadd.f32 %v252_v11, %v227_v10 }
 0x189   : > { %256 = vst.msk [vmem:[%s198_s30] sm:$0xff] %vm255_vm3, %v253_v12 }
 0x18a   : > { %501 = shalt.err (!%p498_p9)
}
 0x18b   : > { %376 = dma.vmem_to_hbm [thread:$0]  (%p623_p4), %s272_s4, 128, %s274_s5, %s258_s6  }
 0x18c PF: > { %p388_p10 = scmp.ge.s32.totalorder %s556_s17, 2  ;;  %s285_s19 = sand.u32 1, %s536_s12  }
 0x18d   : > { %s286_s21 = scalar_lea.sflag [#allocation4], %s285_s19 }
 0x18e   : > { %p383_p11 = pnand %p388_p10, %p630_p8 }
 0x190   : > { %p384_p12 = pneg %p383_p11 }
 0x192   : > { %531 = dma.done.wait (%p384_p12), %s286_s21, 128  }
 0x193   : > { %533 = vsyncadd (%p384_p12), %s286_s21, 4294967168  ;;  %s17_s17 = sadd.s32 1, %s556_s17   ;;  %s692_s12 = smov %s540_s13 }
 0x194   : > { %p14_p13 = scmp.ge.s32.totalorder %s17_s17, 4   ;;  %s693_s13 = smov %s544_s14 }
 0x195   : > { %s694_s14 = smov %s636_s25  ;;  %s695_s15 = smov %s552_s16 }
 0x196   : > { %s696_s16 = smov %s698_s20  ;;  %16 = sbr.rel (!%p14_p13) target bundleno = 5 (0x5), region = 72 }
 0x19b   :  { %292 = vsyncpa [#allocation3], 1 }
 0x19c   :  { %294 = vsyncpa [#allocation3 + $0x1], 1 }
 0x19d   :  { %295 = vsyncpa [#allocation4], 1 }
 0x19e   :  { %297 = vsyncpa [#allocation4 + $0x1], 1 }

</bundles_post_ra>
